<compile_context>
chip_gen: v5e
topology: v5e:2x2
jax: 0.10.0
libtpu: 0.0.40
codegen_flags: <defaults>
</compile_context>

<pallas_src>
import functools
import math

import jax
import jax.numpy as jnp
from jax.experimental import pallas as pl
from jax.experimental.pallas import tpu as pltpu

_LANE = 128     # last-dim (lane) alignment for K / N
_SUBLANE = 8    # second-minor alignment for f32 activations
_TM_MAX = 256   # row-tile cap (small VMEM footprint; >=2 parallel tiles on v7x
                # whenever M is large enough to matter)


def _round_up(x, m):
    return (x + m - 1) // m * m


# ------------------------------ fused kernel -------------------------------

def _res_chain_kernel(x_ref, w0_ref, b0_ref, wres_ref, bres_ref,
                      o_ref, y_ref, *, compute_dtype):
    """One grid step = (row tile i, layer l).

    l == 0        : y = x @ W0 + b0                     (first block)
    l in [1, L]   : y = y + (y @ Wres[l-1] + bres[l-1]) (res blocks)
    l == last     : write the y tile to the HBM output.

    The activation tile lives in y_ref (VMEM scratch) for the whole layer
    axis; there is no separate accumulator and no intermediate HBM traffic.
    """
    l = pl.program_id(1)
    last = pl.num_programs(1) - 1

    @pl.when(l == 0)
    def _first():
        # In-kernel cast of the (tm, Kp) tile to the matmul dtype (no wrapper
        # cast pass over the activation); accumulate / bias in f32.
        acc = jnp.dot(x_ref[...].astype(compute_dtype), w0_ref[...],
                      preferred_element_type=jnp.float32)
        y_ref[...] = acc + b0_ref[...]

    @pl.when(l > 0)
    def _res():
        y = y_ref[...]
        acc = jnp.dot(y.astype(compute_dtype), wres_ref[0],
                      preferred_element_type=jnp.float32)
        y_ref[...] = y + acc + bres_ref[0]      # fused residual + bias (f32)

    @pl.when(l == last)
    def _write():
        o_ref[...] = y_ref[...].astype(o_ref.dtype)


# ------------------------- parameter construction -------------------------

def init_block_params(key, in_channels, out_channels, bias=False,
                      is_zero_init=True):
    """Mirror of Block.init_weights: weight uniform(-0.1, 0.1) or zeros,
    bias constant 0.  Stored pre-transposed to (K, N) and zero-padded to
    lane-aligned (Kp, Np) (multiples of 128).  Zero padding keeps the padded
    rows/cols numerically inert through the whole residual chain.  A zero
    bias is always materialized (bias=False adds exact zeros, which is
    numerically identical and keeps a single fused kernel)."""
    kp = _round_up(in_channels, _LANE)
    np_ = _round_up(out_channels, _LANE)
    if is_zero_init:
        w = jnp.zeros((out_channels, in_channels), jnp.float32)
    else:
        w = jax.random.uniform(key, (out_channels, in_channels), jnp.float32,
                               minval=-0.1, maxval=0.1)
    w_kn = jnp.pad(w.T, ((0, kp - in_channels), (0, np_ - out_channels)))
    b2d = jnp.zeros((1, np_), jnp.float32)
    return {"w_kn": w_kn, "bias": b2d, "in": in_channels, "out": out_channels,
            "has_bias": bias}


def init_res_block_params(key, config):
    """ResBlock.__init__: first block uniform(-0.1, 0.1); res blocks zero-init."""
    keys = jax.random.split(key, config["num_res_layer"] + 1)
    first = init_block_params(keys[0], config["in_channels"],
                              config["out_channels"], bias=config["bias"],
                              is_zero_init=False)
    res = [
        init_block_params(keys[i + 1], config["out_channels"],
                          config["out_channels"], bias=config["bias"],
                          is_zero_init=True)
        for i in range(config["num_res_layer"])
    ]
    return {"first": first, "res": res}


# ------------------------------- forward ----------------------------------

def res_block_forward(x, params):
    """ResBlock.forward:
        x_hat = first_block(x)
        for blk in res_blocks: x_hat = x_hat + blk(x_hat)
    (Block constructs nn.Tanh but never applies it in forward, so no tanh.)

    The matmuls run in the dtype the weights are stored in (f32 or bf16);
    accumulation, bias and residual adds stay f32.  One pallas_call computes
    the entire chain.
    """
    first = params["first"]
    res = params["res"]
    compute_dtype = first["w_kn"].dtype

    *lead, k_in = x.shape
    assert k_in == first["in"]
    m = math.prod(lead) if lead else 1
    n = first["out"]

    kp0, np_ = first["w_kn"].shape
    num_layers = len(res)

    # Stack res weights / biases once: (L, Np, Np) and (L, 1, Np).
    if num_layers:
        wres = jnp.stack([blk["w_kn"] for blk in res])
        bres = jnp.stack([blk["bias"] for blk in res])
    else:  # dummy slot, never used (layer grid axis has size 1)
        wres = jnp.zeros((1, np_, np_), compute_dtype)
        bres = jnp.zeros((1, 1, np_), jnp.float32)

    # Row tiling: a single tile for small M; <=256-row tiles for large M so
    # the "parallel" M axis has >=2 tiles on v7x.  M is padded up to the tile
    # size, so tiles never collapse to awkward shapes.
    tm = min(_round_up(m, _SUBLANE), _TM_MAX)
    mp = _round_up(m, tm)
    grid = (mp // tm, num_layers + 1)

    # Pad activations once; padded rows/cols are zero and stay inert.
    x2d = jnp.pad(x.reshape(m, k_in).astype(jnp.float32),
                  ((0, mp - m), (0, kp0 - k_in)))

    # VMEM budget: double-buffered input/output blocks + resident y scratch.
    wbytes = jnp.dtype(compute_dtype).itemsize
    est = (2 * tm * kp0 * 4              # x tile (f32), double-buffered
           + 2 * kp0 * np_ * wbytes      # first-layer weight
           + 2 * np_ * np_ * wbytes      # streamed res-layer weight
           + 4 * np_ * 4                 # biases
           + 2 * tm * np_ * 4            # output tile
           + tm * np_ * 4)               # resident activation scratch
    # Override v5e's 16 MiB scoped default; keep headroom under v7x's 64 MiB.
    vmem_limit = int(min(max(2 * est, 32 * 1024 * 1024), 56 * 1024 * 1024))

    kernel = functools.partial(_res_chain_kernel, compute_dtype=compute_dtype)

    def _layer_block(i, l):
        # Layer l (>=1) uses res slot l-1; clamping makes the l==0 fetch act
        # as the prefetch of layer 1's weight (no wasted DMA).
        return (jnp.maximum(l - 1, 0), 0, 0)

    y = pl.pallas_call(
        kernel,
        out_shape=jax.ShapeDtypeStruct((mp, np_), jnp.float32),
        grid=grid,
        in_specs=[
            pl.BlockSpec((tm, kp0), lambda i, l: (i, 0)),    # x: 1 fetch / row tile
            pl.BlockSpec((kp0, np_), lambda i, l: (0, 0)),   # W0: fetched once
            pl.BlockSpec((1, np_), lambda i, l: (0, 0)),     # b0
            pl.BlockSpec((1, np_, np_), _layer_block),       # res W: streamed per layer
            pl.BlockSpec((1, 1, np_), _layer_block),         # res bias
        ],
        out_specs=pl.BlockSpec((tm, np_), lambda i, l: (i, 0)),
        scratch_shapes=[pltpu.VMEM((tm, np_), jnp.float32)],
        compiler_params=pltpu.CompilerParams(
            dimension_semantics=("parallel", "arbitrary"),
            vmem_limit_bytes=vmem_limit,
        ),
    )(x2d, first["w_kn"], first["bias"], wres, bres)

    return y[:m, :n].reshape(*lead, n)


def res_block_reference(x, params):
    """Pure-JAX reference (f32, highest matmul precision)."""
    first = params["first"]
    k, n = first["in"], first["out"]
    y = jnp.dot(x.reshape(-1, k).astype(jnp.float32),
                first["w_kn"][:k, :n].astype(jnp.float32),
                precision=jax.lax.Precision.HIGHEST)
    y = y + first["bias"][:, :n]
    for blk in params["res"]:
        ki, ni = blk["in"], blk["out"]
        z = jnp.dot(y, blk["w_kn"][:ki, :ni].astype(jnp.float32),
                    precision=jax.lax.Precision.HIGHEST)
        z = z + blk["bias"][:, :ni]
        y = y + z
    return y.reshape(*x.shape[:-1], n)


if __name__ == "__main__":
    root = jax.random.PRNGKey(0)
    k_a, k_xa, k_b, k_xb, k_over, k_d, k_d2, k_xd = jax.random.split(root, 8)

    # --- Check A: faithful ResBlock config (res layers zero-init, bias=True) ---
    config_a = dict(in_channels=32, out_channels=64, bias=True, num_res_layer=2)
    params_a = init_res_block_params(k_a, config_a)
    x_a = jax.random.normal(k_xa, (2, 8, config_a["in_channels"]), jnp.float32)
    out_a = jax.block_until_ready(res_block_forward(x_a, params_a))
    ref_a = res_block_reference(x_a, params_a)
    assert out_a.shape == (2, 8, config_a["out_channels"])
    assert jnp.allclose(out_a, ref_a, atol=1e-4, rtol=1e-4)

    # --- Check B: non-zero res weights/biases, Kp(first)=640 != Np=256,
    #     exercises the fused per-layer residual/bias epilogue. ---
    config_b = dict(in_channels=640, out_channels=256, bias=True, num_res_layer=2)
    params_b = init_res_block_params(k_b, config_b)
    over = k_over
    for blk in params_b["res"]:
        over, kw, kbi = jax.random.split(over, 3)
        ki, ni = blk["in"], blk["out"]
        w = jax.random.uniform(kw, (ni, ki), jnp.float32, minval=-0.1, maxval=0.1)
        blk["w_kn"] = blk["w_kn"].at[:ki, :ni].set(w.T)
        blk["bias"] = blk["bias"].at[0, :ni].set(
            jax.random.uniform(kbi, (ni,), jnp.float32, minval=-0.1, maxval=0.1))
    x_b = jax.random.normal(k_xb, (2, 24, config_b["in_channels"]), jnp.float32)
    out_b = jax.block_until_ready(res_block_forward(x_b, params_b))
    ref_b = res_block_reference(x_b, params_b)
    assert out_b.shape == (2, 24, config_b["out_channels"])
    assert jnp.allclose(out_b, ref_b, atol=1e-4, rtol=1e-4)

    # --- Check C: bf16 weights (in-kernel cast of activations), f32 epilogue ---
    params_c = {
        "first": {**params_b["first"],
                  "w_kn": params_b["first"]["w_kn"].astype(jnp.bfloat16)},
        "res": [{**blk, "w_kn": blk["w_kn"].astype(jnp.bfloat16)}
                for blk in params_b["res"]],
    }
    out_c = jax.block_until_ready(res_block_forward(x_b, params_c))
    ref_c = res_block_reference(x_b, params_c)
    assert jnp.allclose(out_c, ref_c, atol=3e-2, rtol=3e-2)

    # --- Check D: unaligned channels (48 -> 192), M=600 rows -> multiple row
    #     tiles (grid_m=3) + M padding, 3 res layers with random weights. ---
    config_d = dict(in_channels=48, out_channels=192, bias=True, num_res_layer=3)
    params_d = init_res_block_params(k_d, config_d)
    over = k_d2
    for blk in params_d["res"]:
        over, kw, kbi = jax.random.split(over, 3)
        ki, ni = blk["in"], blk["out"]
        w = jax.random.uniform(kw, (ni, ki), jnp.float32, minval=-0.1, maxval=0.1)
        blk["w_kn"] = blk["w_kn"].at[:ki, :ni].set(w.T)
        blk["bias"] = blk["bias"].at[0, :ni].set(
            jax.random.uniform(kbi, (ni,), jnp.float32, minval=-0.1, maxval=0.1))
    x_d = jax.random.normal(k_xd, (5, 120, config_d["in_channels"]), jnp.float32)
    out_d = jax.block_until_ready(res_block_forward(x_d, params_d))
    ref_d = res_block_reference(x_d, params_d)
    assert out_d.shape == (5, 120, config_d["out_channels"])
    assert jnp.allclose(out_d, ref_d, atol=1e-4, rtol=1e-4)

    print("KERNEL_OK")
</pallas_src>

<mosaic_0001>
module attributes {stable_mosaic.version = 11 : i64} {
  func.func @_res_chain_kernel(%arg0: i32, %arg1: i32, %arg2: memref<16x128xf32, #tpu.memory_space<vmem>>, %arg3: memref<128x128xf32, #tpu.memory_space<vmem>>, %arg4: memref<1x128xf32, #tpu.memory_space<vmem>>, %arg5: memref<1x128x128xf32, #tpu.memory_space<vmem>>, %arg6: memref<1x1x128xf32, #tpu.memory_space<vmem>>, %arg7: memref<16x128xf32, #tpu.memory_space<vmem>>, %arg8: memref<16x128xf32, #tpu.memory_space<vmem>>) attributes {dimension_semantics = [#tpu.dimension_semantics<parallel>, #tpu.dimension_semantics<arbitrary>], iteration_bounds = array<i64: 1, 3>, scalar_prefetch = 0 : i64, scratch_operands = 1 : i64, tpu.core_type = #tpu.core_type<tc>, window_params = [{transform_indices = @transform_0, window_bounds = array<i64: 16, 128>}, {pipeline_mode = #tpu.pipeline_mode<synchronous>, transform_indices = @transform_1, window_bounds = array<i64: 128, 128>}, {pipeline_mode = #tpu.pipeline_mode<synchronous>, transform_indices = @transform_2, window_bounds = array<i64: 1, 128>}, {transform_indices = @transform_3, window_bounds = array<i64: 1, 128, 128>}, {transform_indices = @transform_4, window_bounds = array<i64: 1, 1, 128>}, {transform_indices = @transform_5, window_bounds = array<i64: 16, 128>}]} {
    %c0_i32 = arith.constant 0 : i32
    %0 = arith.cmpi eq, %arg1, %c0_i32 : i32
    %1 = arith.extui %0 : i1 to i32
    %c0_i32_0 = arith.constant 0 : i32
    %2 = arith.cmpi ne, %1, %c0_i32_0 : i32
    scf.if %2 {
      %c0 = arith.constant 0 : index
      %c0_4 = arith.constant 0 : index
      %9 = vector.load %arg2[%c0, %c0_4] : memref<16x128xf32, #tpu.memory_space<vmem>>, vector<16x128xf32>
      %c0_5 = arith.constant 0 : index
      %c0_6 = arith.constant 0 : index
      %10 = vector.load %arg3[%c0_5, %c0_6] : memref<128x128xf32, #tpu.memory_space<vmem>>, vector<128x128xf32>
      %cst = arith.constant dense<0.000000e+00> : vector<16x128xf32>
      %11 = tpu.matmul %9, %10, %cst {dimension_numbers = #tpu.dot_dimension_numbers<[1], [0], [0], [1], [0, 0, 1, 1], [], []>} : vector<16x128xf32>, vector<128x128xf32>, vector<16x128xf32> -> vector<16x128xf32>
      %c0_7 = arith.constant 0 : index
      %c0_8 = arith.constant 0 : index
      %12 = vector.load %arg4[%c0_7, %c0_8] : memref<1x128xf32, #tpu.memory_space<vmem>>, vector<1x128xf32>
      %13 = vector.broadcast %12 : vector<1x128xf32> to vector<16x128xf32>
      %14 = arith.addf %11, %13 : vector<16x128xf32>
      %c0_9 = arith.constant 0 : index
      %c0_10 = arith.constant 0 : index
      %15 = vector.load %arg8[%c0_9, %c0_10] : memref<16x128xf32, #tpu.memory_space<vmem>>, vector<16x128xf32>
      tpu.vector_store %arg8[%c0_9, %c0_10], %14 {strides = array<i32>} : memref<16x128xf32, #tpu.memory_space<vmem>>, vector<16x128xf32>,
    } else {
    }
    %c0_i32_1 = arith.constant 0 : i32
    %3 = arith.cmpi sgt, %arg1, %c0_i32_1 : i32
    %4 = arith.extui %3 : i1 to i32
    %c0_i32_2 = arith.constant 0 : i32
    %5 = arith.cmpi ne, %4, %c0_i32_2 : i32
    scf.if %5 {
      %c0 = arith.constant 0 : index
      %c0_4 = arith.constant 0 : index
      %9 = vector.load %arg8[%c0, %c0_4] : memref<16x128xf32, #tpu.memory_space<vmem>>, vector<16x128xf32>
      %c0_5 = arith.constant 0 : index
      %c0_6 = arith.constant 0 : index
      %c0_7 = arith.constant 0 : index
      %10 = vector.load %arg5[%c0_5, %c0_6, %c0_7] : memref<1x128x128xf32, #tpu.memory_space<vmem>>, vector<1x128x128xf32>
      %11 = vector.shape_cast %10 : vector<1x128x128xf32> to vector<128x128xf32>
      %cst = arith.constant dense<0.000000e+00> : vector<16x128xf32>
      %12 = tpu.matmul %9, %11, %cst {dimension_numbers = #tpu.dot_dimension_numbers<[1], [0], [0], [1], [0, 0, 1, 1], [], []>} : vector<16x128xf32>, vector<128x128xf32>, vector<16x128xf32> -> vector<16x128xf32>
      %13 = arith.addf %9, %12 : vector<16x128xf32>
      %c0_8 = arith.constant 0 : index
      %c0_9 = arith.constant 0 : index
      %c0_10 = arith.constant 0 : index
      %14 = vector.load %arg6[%c0_8, %c0_9, %c0_10] : memref<1x1x128xf32, #tpu.memory_space<vmem>>, vector<1x1x128xf32>
      %15 = vector.shape_cast %14 : vector<1x1x128xf32> to vector<1x128xf32>
      %16 = vector.broadcast %15 : vector<1x128xf32> to vector<16x128xf32>
      %17 = arith.addf %13, %16 : vector<16x128xf32>
      %c0_11 = arith.constant 0 : index
      %c0_12 = arith.constant 0 : index
      %18 = vector.load %arg8[%c0_11, %c0_12] : memref<16x128xf32, #tpu.memory_space<vmem>>, vector<16x128xf32>
      tpu.vector_store %arg8[%c0_11, %c0_12], %17 {strides = array<i32>} : memref<16x128xf32, #tpu.memory_space<vmem>>, vector<16x128xf32>,
    } else {
    }
    %c2_i32 = arith.constant 2 : i32
    %6 = arith.cmpi eq, %arg1, %c2_i32 : i32
    %7 = arith.extui %6 : i1 to i32
    %c0_i32_3 = arith.constant 0 : i32
    %8 = arith.cmpi ne, %7, %c0_i32_3 : i32
    scf.if %8 {
      %c0 = arith.constant 0 : index
      %c0_4 = arith.constant 0 : index
      %9 = vector.load %arg8[%c0, %c0_4] : memref<16x128xf32, #tpu.memory_space<vmem>>, vector<16x128xf32>
      %c0_5 = arith.constant 0 : index
      %c0_6 = arith.constant 0 : index
      %10 = vector.load %arg7[%c0_5, %c0_6] : memref<16x128xf32, #tpu.memory_space<vmem>>, vector<16x128xf32>
      tpu.vector_store %arg7[%c0_5, %c0_6], %9 {strides = array<i32>} : memref<16x128xf32, #tpu.memory_space<vmem>>, vector<16x128xf32>,
    } else {
    }
    return
  }
  func.func @transform_0(%arg0: i32, %arg1: i32) -> (i32, i32) {
    %c0_i32 = arith.constant 0 : i32
    %c0_i32_0 = arith.constant 0 : i32
    return %arg0, %c0_i32 : i32, i32
  }
  func.func @transform_1(%arg0: i32, %arg1: i32) -> (i32, i32) {
    %c0_i32 = arith.constant 0 : i32
    %c0_i32_0 = arith.constant 0 : i32
    %c0_i32_1 = arith.constant 0 : i32
    return %c0_i32, %c0_i32_0 : i32, i32
  }
  func.func @transform_2(%arg0: i32, %arg1: i32) -> (i32, i32) {
    %c0_i32 = arith.constant 0 : i32
    %c0_i32_0 = arith.constant 0 : i32
    %c0_i32_1 = arith.constant 0 : i32
    return %c0_i32, %c0_i32_0 : i32, i32
  }
  func.func @transform_3(%arg0: i32, %arg1: i32) -> (i32, i32, i32) {
    %c1_i32 = arith.constant 1 : i32
    %0 = arith.subi %arg1, %c1_i32 : i32
    %c0_i32 = arith.constant 0 : i32
    %1 = arith.maxsi %0, %c0_i32 : i32
    %c0_i32_0 = arith.constant 0 : i32
    %c0_i32_1 = arith.constant 0 : i32
    %c0_i32_2 = arith.constant 0 : i32
    return %1, %c0_i32_0, %c0_i32_1 : i32, i32, i32
  }
  func.func @transform_4(%arg0: i32, %arg1: i32) -> (i32, i32, i32) {
    %c1_i32 = arith.constant 1 : i32
    %0 = arith.subi %arg1, %c1_i32 : i32
    %c0_i32 = arith.constant 0 : i32
    %1 = arith.maxsi %0, %c0_i32 : i32
    %c0_i32_0 = arith.constant 0 : i32
    %c0_i32_1 = arith.constant 0 : i32
    %c0_i32_2 = arith.constant 0 : i32
    return %1, %c0_i32_0, %c0_i32_1 : i32, i32, i32
  }
  func.func @transform_5(%arg0: i32, %arg1: i32) -> (i32, i32) {
    %c0_i32 = arith.constant 0 : i32
    %c0_i32_0 = arith.constant 0 : i32
    return %arg0, %c0_i32 : i32, i32
  }
}

</mosaic_0001>

<bundles_post_ra>
// kernel: tpu_custom_call.1
= control target key start
LH: loop header
LB: loop body
LE: loop exit
PB: predicated region body
PF: predicated region fallthrough
CT: control target
= control target key end

     0   :  { %s1094_s0 = inlined_call_operand.hbm [shape: f32[16,128], index: 0, kind: input, shape index: {}]   ;;  %s1095_s1 = inlined_call_operand.hbm [shape: f32[128,128], index: 1, kind: input, shape index: {}]   ;;  %s1096_s2 = inlined_call_operand.vmem [shape: f32[1,128], index: 2, kind: input, shape index: {}]   ;;  %s1097_s3 = inlined_call_operand.hbm [shape: f32[2,128,128], index: 3, kind: input, shape index: {}]   ;;  %s1098_s4 = inlined_call_operand.vmem [shape: f32[2,1,128], index: 4, kind: input, shape index: {}]   ;;  %s1099_s5 = inlined_call_operand.hbm [shape: f32[16,128], index: 5, kind: output, shape index: {}]  }
   0x1   :  { %1102 = sst [smem:[#allocation14_spill]] %s1094_s0 }
   0x2   :  { %1103 = sst [smem:[#allocation15_spill]] %s1095_s1 }
   0x3   :  { %10 = vsyncpa [#allocation4], 0 }
   0x4   :  { %11 = vsyncpa [#allocation7], 0 }
   0x5   :  { %12 = vsyncpa [#allocation5], 0  ;;  %s930_s18 = smov 0   ;;  %s932_s19 = smov 0  }
   0x6   :  { %s934_s20 = smov 0   ;;  %s936_s21 = smov 0  }
   0x7   :  { %s938_s22 = smov 0   ;;  %s940_s23 = smov 0  }
   0x8 LB: > { %s959_s24 = sadd.s32 4294967295, %s891_s23   ;;  %p124_p0 = scmp.ne.s32.totalorder %s875_s19, %s871_s18  ;;  %s891_s23 = sphi %s940_s23, %s18_s23   ;;  %s887_s22 = sphi %s938_s22, %s1115_s22   ;;  %s883_s21 = sphi %s936_s21, %s1114_s21   ;;  %s879_s20 = sphi %s934_s20, %s1113_s20   ;;  %s875_s19 = sphi %s932_s19, %s1112_s19   ;;  %s871_s18 = sphi %s930_s18, %s1111_s18  }
   0x9   : > { %p125_p1 = scmp.eq.s32.totalorder %s959_s24, 0  ;;  %p562_p2 = scmp.ge.s32.totalorder %s891_s23, 1 }
   0xa   : > { %p193_p3 = scmp.lt.s32.totalorder %s891_s23, 4  ;;  %s1105_s0 = sld [smem:[#allocation14_spill]] }
   0xb   : > { %p967_p4 = por %p125_p1, %p124_p0  ;;  %s893_s30 = smov [#allocation3]  }
   0xc   : > { %p974_p5 = pnand %p562_p2, %p193_p3  ;;  %s209_s6 = sshll.u32 %s893_s30, 4  ;;  %s210_s6 = int_to_ptr.vmem [resolvable:$true] %s209_s6 }
   0xd   : > { %s1107_s1 = sld [smem:[#allocation15_spill]]  ;;  %s1100_s10 = smov 128  }
   0xe   : > { %p636_p6 = pneg %p974_p5  ;;  %s1101_s11 = smov 8  }
   0xf   : > { %s896_s12 = smov [#allocation6]   ;;  %s27_s14 = sadd.s32 1, %s887_s22 }
  0x10   : > { %s207_s28 = sshll.u32 %s1105_s0, 4  ;;  %p637_p7 = pnand %p636_p6, %p125_p1  ;;  %s208_s28 = int_to_ptr.hbm [resolvable:$true] %s207_s28 }
  0x11   : > { %s223_s13 = sshll.u32 %s896_s12, 4  ;;  %s558_s15 = sadd.s32 4294967295, %s887_s22  ;;  %s224_s13 = int_to_ptr.vmem [resolvable:$true] %s223_s13 }
  0x12   : > { %639 = dma.hbm_to_vmem [thread:$0]  (!%p637_p7), %s208_s28, 256, %s210_s6, [#allocation4], %s1100_s10, %s1100_s10, %s1101_s11  }
  0x13   : > { %s221_s9 = sshll.u32 %s1107_s1, 4  ;;  %p28_p8 = scmp.ge.s32.totalorder %s27_s14, 3  ;;  %s222_s9 = int_to_ptr.hbm [resolvable:$true] %s221_s9 }
  0x14   : > { %642 = dma.hbm_to_vmem [thread:$0]  (!%p637_p7), %s222_s9, 2048, %s224_s13, [#allocation7], %s1100_s10, %s1100_s10, %s1101_s11  }
  0x15   : > { %p103_p9 = scmp.gt.s32.totalorder %s558_s15, 0  ;;  %s111_s16 = sadd.s32 1, %s879_s20 }
  0x16   : > { %p118_p10 = scmp.ne.s32.totalorder %s879_s20, %s875_s19  ;;  %s1117_s14 = smov (%p28_p8, %s27_s14), 0 }
  0x17   : > { %s1119_s15 = smov (!%p103_p9, %s558_s15), 0  ;;  %s559_s17 = sadd.s32 4294967295, %s1117_s14 }
  0x18   : > { %p119_p11 = scmp.eq.s32.totalorder %s891_s23, 0  ;;  %p106_p12 = scmp.gt.s32.totalorder %s559_s17, 0 }
  0x19   : > { %p649_p13 = scmp.lt.s32.totalorder %s891_s23, 3  ;;  %s240_s26 = sand.u32 1, %s891_s23  }
  0x1a   : > { %p1001_p0 = por %p119_p11, %p118_p10  ;;  %s1121_s17 = smov (!%p106_p12, %s559_s17), 0 }
  0x1b   : > { %s242_s27 = sand.u32 1, %s879_s20   ;;  %s108_s28 = ssub.s32 %s1119_s15, %s1121_s17 }
  0x1c   : > { %s566_s30 = sshll.u32 %s242_s27, 7  ;;  %p109_p2 = scmp.eq.s32.totalorder %s108_s28, 0 }
  0x1d   : > { %s587_s6 = sshll.u32 %s1119_s15, 7  ;;  %s244_s7 = scalar_lea.vmem [#allocation8], %s566_s30 }
  0x1e   : > { %s255_s8 = sshll.u32 %s244_s7, 4  ;;  %s252_s10 = scalar_lea.hbm %s1097_s3, %s587_s6  ;;  %s256_s8 = int_to_ptr.vmem [resolvable:$true] %s255_s8 }
  0x1f   : > { %s1008_s9 = scalar_select %p109_p2, %s879_s20, %s111_s16  }
  0x20   : > { %s253_s11 = sshll.u32 %s252_s10, 4  ;;  %p644_p3 = pnand %p649_p13, %p1001_p0  ;;  %s254_s11 = int_to_ptr.hbm [resolvable:$true] %s253_s11 }
  0x21   : > { %s241_s0 = scalar_lea.sflag [#allocation4], %s240_s26  ;;  %s1109_s1 = smov 8  }
  0x22   : > { %s1110_s17 = smov 128   ;;  %279 = sbr.rel (%p974_p5) target bundleno = 402 (0x192), region = 40 }
  0x23   : > { %646 = dma.hbm_to_vmem [thread:$0]  (!%p644_p3), %s254_s11, 2048, %s256_s8, %s241_s0, %s1110_s17, %s1110_s17, %s1109_s1  }
  0x27   : > { %854 = dma.done.wait (%p125_p1), [#allocation4], 256  }
  0x28   : > { %856 = vsyncadd (%p125_p1), [#allocation4], 4294967040 }
  0x29   : > { %858 = dma.done.wait (%p125_p1), [#allocation7], 2048  }
  0x2a   : > { %860 = vsyncadd (%p125_p1), [#allocation7], 4294965248  ;;  %s291_s10 = sand.u32 1, %s959_s24   ;;  %s293_s0 = sand.u32 1, %s875_s19  }
  0x2b   : > { %s573_s1 = sshll.u32 %s293_s0, 7  ;;  %s292_s29 = scalar_lea.sflag [#allocation4], %s291_s10 }
  0x2c   : > { %s1032_s11 = scalar_lea.vmem [#allocation8], %s573_s1 }
  0x2d   : > { %862 = dma.done.wait (%p967_p4), %s292_s29, 2048  }
  0x2e   : > { %864 = vsyncadd (%p967_p4), %s292_s29, 4294965248  ;;  %s574_s15 = sadd.s32 4294967295, %s883_s21  ;;  %p580_p1 = scmp.ne.s32.totalorder %s883_s21, 0 }
  0x2f   : > { %p329_p5 = scmp.gt.s32.totalorder %s574_s15, 0  ;;  %p575_p6 = scmp.lt.s32.totalorder %s574_s15, 1 }
  0x30   : > { %341 = sbr.rel (%p580_p1) target bundleno = 215 (0xd7), region = 56 }
  0x31   : > { %s1123_s15 = smov (!%p329_p5, %s574_s15), 0 }
  0x32   : > { %s1125_s15 = smov (!%p575_p6, %s1123_s15), 1 }
  0x33   : > { %s333_s26 = scalar_lea.vmem %s1098_s4, %s1125_s15 }
  0x35   : > { %v359_v0 = vld [vmem:[#allocation6 + $0x78] sm:$0xff]  ;;  %v358_v1 = vld [vmem:[#allocation6 + $0x70] sm:$0xff]  ;;  %v357_v2 = vld [vmem:[#allocation6 + $0x68] sm:$0xff] }
  0x36   : > { %364 = vmatpush.msra.mxu0 %v359_v0  ;;  %590 = vmatpush.msra.mxu1 %v359_v0  ;;  %v356_v3 = vld [vmem:[#allocation6 + $0x60] sm:$0xff]  ;;  %v355_v4 = vld [vmem:[#allocation6 + $0x58] sm:$0xff]  ;;  %v354_v5 = vld [vmem:[#allocation6 + $0x50] sm:$0xff] }
  0x37   : > { %v353_v6 = vld [vmem:[#allocation6 + $0x48] sm:$0xff]  ;;  %v352_v7 = vld [vmem:[#allocation6 + $0x40] sm:$0xff]  ;;  %v351_v8 = vld [vmem:[#allocation6 + $0x38] sm:$0xff] }
  0x38   : > { %365 = vmatpush.msra.mxu0 %v358_v1  ;;  %591 = vmatpush.msra.mxu1 %v358_v1  ;;  %v350_v9 = vld [vmem:[#allocation6 + $0x30] sm:$0xff]  ;;  %v349_v10 = vld [vmem:[#allocation6 + $0x28] sm:$0xff]  ;;  %v348_v11 = vld [vmem:[#allocation6 + $0x20] sm:$0xff] }
  0x39   : > { %v347_v12 = vld [vmem:[#allocation6 + $0x18] sm:$0xff]  ;;  %v346_v13 = vld [vmem:[#allocation6 + $0x10] sm:$0xff]  ;;  %v345_v14 = vld [vmem:[#allocation6 + $0x8] sm:$0xff] }
  0x3a   : > { %366 = vmatpush.msra.mxu0 %v357_v2  ;;  %592 = vmatpush.msra.mxu1 %v357_v2  ;;  %v344_v15 = vld [vmem:[#allocation6] sm:$0xff]  ;;  %v342_v16 = vld [vmem:[#allocation3] sm:$0xff]  ;;  %v343_v17 = vld [vmem:[#allocation3 + $0x8] sm:$0xff] }
  0x3b   : > { %v709_v18 = vld [vmem:[%s1096_s2] ss:$0 sm:$0xff] }
  0x3c   : > { %367 = vmatpush.msra.mxu0 %v356_v3  ;;  %593 = vmatpush.msra.mxu1 %v356_v3 }
  0x3e   : > { %368 = vmatpush.msra.mxu0 %v355_v4  ;;  %594 = vmatpush.msra.mxu1 %v355_v4 }
  0x40   : > { %369 = vmatpush.msra.mxu0 %v354_v5  ;;  %595 = vmatpush.msra.mxu1 %v354_v5 }
  0x42   : > { %370 = vmatpush.msra.mxu0 %v353_v6  ;;  %596 = vmatpush.msra.mxu1 %v353_v6 }
  0x44   : > { %371 = vmatpush.msra.mxu0 %v352_v7  ;;  %597 = vmatpush.msra.mxu1 %v352_v7 }
  0x46   : > { %372 = vmatpush.msra.mxu0 %v351_v8  ;;  %598 = vmatpush.msra.mxu1 %v351_v8 }
  0x48   : > { %373 = vmatpush.msra.mxu0 %v350_v9  ;;  %599 = vmatpush.msra.mxu1 %v350_v9 }
  0x4a   : > { %374 = vmatpush.msra.mxu0 %v349_v10  ;;  %600 = vmatpush.msra.mxu1 %v349_v10 }
  0x4c   : > { %375 = vmatpush.msra.mxu0 %v348_v11  ;;  %601 = vmatpush.msra.mxu1 %v348_v11 }
  0x4e   : > { %376 = vmatpush.msra.mxu0 %v347_v12  ;;  %602 = vmatpush.msra.mxu1 %v347_v12 }
  0x50   : > { %377 = vmatpush.msra.mxu0 %v346_v13  ;;  %603 = vmatpush.msra.mxu1 %v346_v13 }
  0x52   : > { %378 = vmatpush.msra.mxu0 %v345_v14  ;;  %604 = vmatpush.msra.mxu1 %v345_v14 }
  0x54   : > { %379 = vmatpush.msra.mxu0 %v344_v15  ;;  %605 = vmatpush.msra.mxu1 %v344_v15 }
  0x55   : > { %380 = vmatmul.f32.vlgmr.msra.gmra.mxu0 %v342_v16  ;;  %383 = vmatmul.f32.vlgmr.msra.gmra.mxu1 %v343_v17 }
  0xd2   : > { %v381_v19 = vpop.f32.mrf.mxu0  ;;  %v384_v20 = vpop.f32.mrf.mxu1 }
  0xd3   : > { %v382_v21 = vadd.f32 %v709_v18, %v381_v19  ;;  %v385_v22 = vadd.f32 %v709_v18, %v384_v20 }
  0xd5   : > { %387 = vst [vmem:[#allocation2] sm:$0xff] %v382_v21 }
  0xd6   : > { %388 = vst [vmem:[#allocation2 + $0x8] sm:$0xff] %v385_v22 }
  0xd7 PF: > { %p581_p4 = scmp.le.s32.totalorder %s883_s21, 0 }
  0xd9   : > { %392 = sbr.rel (%p581_p4) target bundleno = 386 (0x182), region = 60 }
  0xde   : > { %v410_v23 = vld [vmem:[%s1032_s11 + $0x78] sm:$0xff]  ;;  %v409_v24 = vld [vmem:[%s1032_s11 + $0x70] sm:$0xff]  ;;  %v408_v25 = vld [vmem:[%s1032_s11 + $0x68] sm:$0xff] }
  0xdf   : > { %411 = vmatpush.msra.mxu0 %v410_v23  ;;  %606 = vmatpush.msra.mxu1 %v410_v23  ;;  %v407_v26 = vld [vmem:[%s1032_s11 + $0x60] sm:$0xff]  ;;  %v406_v27 = vld [vmem:[%s1032_s11 + $0x58] sm:$0xff]  ;;  %v405_v28 = vld [vmem:[%s1032_s11 + $0x50] sm:$0xff] }
  0xe0   : > { %v404_v29 = vld [vmem:[%s1032_s11 + $0x48] sm:$0xff]  ;;  %v403_v30 = vld [vmem:[%s1032_s11 + $0x40] sm:$0xff]  ;;  %v402_v31 = vld [vmem:[%s1032_s11 + $0x38] sm:$0xff] }
  0xe1   : > { %412 = vmatpush.msra.mxu0 %v409_v24  ;;  %607 = vmatpush.msra.mxu1 %v409_v24  ;;  %v401_v32 = vld [vmem:[%s1032_s11 + $0x30] sm:$0xff]  ;;  %v400_v33 = vld [vmem:[%s1032_s11 + $0x28] sm:$0xff]  ;;  %v399_v34 = vld [vmem:[%s1032_s11 + $0x20] sm:$0xff] }
  0xe2   : > { %v398_v35 = vld [vmem:[%s1032_s11 + $0x18] sm:$0xff]  ;;  %v397_v36 = vld [vmem:[%s1032_s11 + $0x10] sm:$0xff]  ;;  %v396_v37 = vld [vmem:[%s1032_s11 + $0x8] sm:$0xff] }
  0xe3   : > { %413 = vmatpush.msra.mxu0 %v408_v25  ;;  %608 = vmatpush.msra.mxu1 %v408_v25  ;;  %v395_v38 = vld [vmem:[%s1032_s11] sm:$0xff]  ;;  %v394_v40 = vld [vmem:[#allocation2 + $0x8] sm:$0xff] }
  0xe4   : > { %v393_v39 = vld [vmem:[#allocation2] sm:$0xff] }
  0xe5   : > { %414 = vmatpush.msra.mxu0 %v407_v26  ;;  %609 = vmatpush.msra.mxu1 %v407_v26  ;;  %v710_v41 = vld [vmem:[%s333_s26] ss:$0 sm:$0xff] }
  0xe7   : > { %415 = vmatpush.msra.mxu0 %v406_v27  ;;  %610 = vmatpush.msra.mxu1 %v406_v27 }
  0xe9   : > { %416 = vmatpush.msra.mxu0 %v405_v28  ;;  %611 = vmatpush.msra.mxu1 %v405_v28 }
  0xeb   : > { %417 = vmatpush.msra.mxu0 %v404_v29  ;;  %612 = vmatpush.msra.mxu1 %v404_v29 }
  0xed   : > { %418 = vmatpush.msra.mxu0 %v403_v30  ;;  %613 = vmatpush.msra.mxu1 %v403_v30 }
  0xef   : > { %419 = vmatpush.msra.mxu0 %v402_v31  ;;  %614 = vmatpush.msra.mxu1 %v402_v31 }
  0xf1   : > { %420 = vmatpush.msra.mxu0 %v401_v32  ;;  %615 = vmatpush.msra.mxu1 %v401_v32 }
  0xf3   : > { %421 = vmatpush.msra.mxu0 %v400_v33  ;;  %616 = vmatpush.msra.mxu1 %v400_v33 }
  0xf5   : > { %422 = vmatpush.msra.mxu0 %v399_v34  ;;  %617 = vmatpush.msra.mxu1 %v399_v34 }
  0xf7   : > { %423 = vmatpush.msra.mxu0 %v398_v35  ;;  %618 = vmatpush.msra.mxu1 %v398_v35 }
  0xf9   : > { %424 = vmatpush.msra.mxu0 %v397_v36  ;;  %619 = vmatpush.msra.mxu1 %v397_v36 }
  0xfb   : > { %425 = vmatpush.msra.mxu0 %v396_v37  ;;  %620 = vmatpush.msra.mxu1 %v396_v37 }
  0xfd   : > { %426 = vmatpush.msra.mxu0 %v395_v38  ;;  %621 = vmatpush.msra.mxu1 %v395_v38 }
  0xfe   : > { %427 = vmatmul.f32.vlgmr.msra.gmra.mxu0 %v393_v39  ;;  %430 = vmatmul.f32.vlgmr.msra.gmra.mxu1 %v394_v40 }
 0x17b   : > { %v428_v42 = vpop.f32.mrf.mxu0  ;;  %v431_v43 = vpop.f32.mrf.mxu1 }
 0x17c   : > { %v434_v44 = vadd.f32 %v428_v42, %v393_v39  ;;  %v435_v45 = vadd.f32 %v431_v43, %v394_v40 }
 0x17e   : > { %v440_v46 = vadd.f32 %v710_v41, %v434_v44  ;;  %v441_v47 = vadd.f32 %v710_v41, %v435_v45 }
 0x180   : > { %442 = vst [vmem:[#allocation2] sm:$0xff] %v440_v46 }
 0x181   : > { %443 = vst [vmem:[#allocation2 + $0x8] sm:$0xff] %v441_v47 }
 0x182 PF: > { %p582_p7 = scmp.ne.s32.totalorder %s883_s21, 2 }
 0x184   : > { %447 = sbr.rel (%p582_p7) target bundleno = 396 (0x18c), region = 64 }
 0x189   : > { %v448_v48 = vld [vmem:[#allocation2] sm:$0xff]  ;;  %v449_v49 = vld [vmem:[#allocation2 + $0x8] sm:$0xff] }
 0x18a   : > { %450 = vst [vmem:[#allocation9] sm:$0xff] %v448_v48 }
 0x18b   : > { %451 = vst [vmem:[#allocation9 + $0x8] sm:$0xff] %v449_v49 }
 0x18c PF: > { %p652_p8 = scmp.eq.s32.totalorder %s959_s24, 2  ;;  %s462_s8 = sshll.u32 %s1099_s5, 4  ;;  %s463_s8 = int_to_ptr.hbm [resolvable:$true] %s462_s8 }
 0x18d   : > { %s897_s12 = smov [#allocation9]   ;;  %s898_s17 = smov 128  }
 0x18e   : > { %s460_s13 = sshll.u32 %s897_s12, 4  ;;  %s899_s10 = smov 8   ;;  %s461_s13 = int_to_ptr.vmem [resolvable:$true] %s460_s13 }
 0x18f   : > { %633 = dma.vmem_to_hbm [thread:$0]  (%p652_p8), %s461_s13, 256, %s463_s8, [#allocation5], %s898_s17, %s898_s17, %s899_s10  }
 0x190   : > { %866 = dma.done.wait (%p652_p8), [#allocation5], 256  }
 0x191   : > { %868 = vsyncadd (%p652_p8), [#allocation5], 4294967040 }
 0x192 PF: > { %s18_s23 = sadd.s32 1, %s891_s23   ;;  %s1111_s18 = smov %s875_s19 }
 0x193   : > { %p15_p9 = scmp.ge.s32.totalorder %s18_s23, 5   ;;  %s1112_s19 = smov %s879_s20 }
 0x194   : > { %s1113_s20 = smov %s1008_s9  ;;  %s1114_s21 = smov %s887_s22 }
 0x195   : > { %s1115_s22 = smov %s1117_s14  ;;  %17 = sbr.rel (!%p15_p9) target bundleno = 8 (0x8), region = 101 }
 0x19a   :  { %479 = vsyncpa [#allocation4], 1 }
 0x19b   :  { %481 = vsyncpa [#allocation4 + $0x1], 1 }
 0x19c   :  { %482 = vsyncpa [#allocation7], 1 }
 0x19d   :  { %483 = vsyncpa [#allocation5], 1 }
 0x19e   :  { %485 = vsyncpa [#allocation5 + $0x1], 1 }

</bundles_post_ra>
